<compile_context>
chip_gen: v5e
topology: v5e:2x2
jax: 0.10.0
libtpu: 0.0.40
codegen_flags: <defaults>
</compile_context>

<pallas_src>
import functools

import jax
import jax.numpy as jnp
from jax.experimental import pallas as pl
from jax.experimental.pallas import tpu as pltpu

_EPS = 1e-5
_LANE = 128


def _instance_norm_lanes(x, hw_valid, hw_pad, eps=_EPS):
    """Per-(sample, channel) normalization over the lane axis (= H*W)."""
    if hw_valid == hw_pad:
        mean = jnp.mean(x, axis=-1, keepdims=True)
        xc = x - mean
        var = jnp.mean(xc * xc, axis=-1, keepdims=True)
        return xc * jax.lax.rsqrt(var + eps)
    # Padded lanes carry zeros (zero-padded inputs, bias-free convs), so the
    # raw sums are already exact; only the denominator and the centered
    # values need masking.
    inv_n = jnp.float32(1.0 / hw_valid)
    mask = jax.lax.broadcasted_iota(jnp.int32, x.shape, x.ndim - 1) < hw_valid
    mean = jnp.sum(x, axis=-1, keepdims=True) * inv_n
    xc = jnp.where(mask, x - mean, 0.0)
    var = jnp.sum(xc * xc, axis=-1, keepdims=True) * inv_n
    return xc * jax.lax.rsqrt(var + eps)


def _conv1x1(w, x):
    """1x1 conv: (Cout, Cin) applied to (Nb, Cin, HW) -> (Nb, Cout, HW) f32."""
    cout, cin = w.shape
    if cin <= 16 and cout <= 32:
        # Tiny contraction: K=cin uses a few percent of the MXU depth, so the
        # vmatmul push/pop latency costs more than cin VPU FMAs per row.
        w = w.astype(jnp.float32)
        x = x.astype(jnp.float32)
        acc = w[:, 0:1][None, :, :] * x[:, 0:1, :]
        for c in range(1, cin):
            acc = acc + w[:, c:c + 1][None, :, :] * x[:, c:c + 1, :]
        return acc
    # Production channel counts: lane-dense MXU matmul (lane dim = HW), f32 acc.
    return jnp.einsum("oc,nch->noh", w, x, preferred_element_type=jnp.float32)


def _attention_block_kernel(g_ref, x_ref, wg_ref, wx_ref, wpsi_ref, o_ref,
                            *, hw_valid, hw_pad):
    """One batch tile, everything VMEM-resident.

    g_ref    : (Nb, F_g, HW)    x_ref   : (Nb, F_l, HW)
    wg_ref   : (F_int, F_g)     wx_ref  : (F_int, F_l)
    wpsi_ref : (F_int, 1)       o_ref   : (Nb, F_l, HW)
    (conv biases are omitted: InstanceNorm's mean subtraction cancels them)
    """
    g = g_ref[...]
    x = x_ref[...]

    g1 = _instance_norm_lanes(_conv1x1(wg_ref[...], g), hw_valid, hw_pad)
    x1 = _instance_norm_lanes(_conv1x1(wx_ref[...], x), hw_valid, hw_pad)

    p = jnp.maximum(g1 + x1, 0.0)                         # (Nb, F_int, HW) f32

    # psi 1x1 conv to a single channel: VPU multiply + XLU sublane reduce
    # instead of an M=1 MXU matmul.
    wpsi = wpsi_ref[...].astype(jnp.float32)              # (F_int, 1)
    psi = jnp.sum(wpsi[None, :, :] * p, axis=1, keepdims=True)   # (Nb, 1, HW)
    psi = _instance_norm_lanes(psi, hw_valid, hw_pad)
    psi = jax.nn.sigmoid(psi)                             # EUP

    # Gate the skip connection (broadcast psi over channels).
    o_ref[...] = (x.astype(jnp.float32) * psi).astype(o_ref.dtype)


@functools.partial(
    jax.jit, static_argnames=("num_blocks", "hw_valid", "vmem_limit_bytes"))
def _attention_block_call(g_flat, x_flat, wg, wx, wpsi, *, num_blocks,
                          hw_valid, vmem_limit_bytes):
    N, F_g, HW_pad = g_flat.shape
    _, F_l, _ = x_flat.shape
    F_int = wg.shape[0]
    Nb = N // num_blocks

    kernel = functools.partial(
        _attention_block_kernel, hw_valid=hw_valid, hw_pad=HW_pad)

    return pl.pallas_call(
        kernel,
        out_shape=jax.ShapeDtypeStruct((N, F_l, HW_pad), x_flat.dtype),
        grid=(num_blocks,),
        in_specs=[
            pl.BlockSpec((Nb, F_g, HW_pad), lambda n: (n, 0, 0)),
            pl.BlockSpec((Nb, F_l, HW_pad), lambda n: (n, 0, 0)),
            pl.BlockSpec((F_int, F_g), lambda n: (0, 0)),
            pl.BlockSpec((F_int, F_l), lambda n: (0, 0)),
            pl.BlockSpec((F_int, 1), lambda n: (0, 0)),
        ],
        out_specs=pl.BlockSpec((Nb, F_l, HW_pad), lambda n: (n, 0, 0)),
        compiler_params=pltpu.CompilerParams(
            dimension_semantics=("parallel",),
            vmem_limit_bytes=vmem_limit_bytes),
    )(g_flat, x_flat, wg, wx, wpsi)


def _tpu_device_kind():
    try:
        return jax.devices()[0].device_kind.lower()
    except Exception:
        return ""


def attention_block_forward(g_nchw, x_nchw, params, storage_dtype=None):
    """g: (N, F_g, H, W), x: (N, F_l, H, W) -> (N, F_l, H, W)."""
    N, F_g, H, W = g_nchw.shape
    _, F_l, _, _ = x_nchw.shape
    HW = H * W
    HW_pad = ((HW + _LANE - 1) // _LANE) * _LANE     # keep the output lane-dense

    dtype = storage_dtype if storage_dtype is not None else g_nchw.dtype

    # NCHW -> (N, C, H*W): contiguous reshape, no transpose.
    g_flat = g_nchw.reshape(N, F_g, HW).astype(dtype)
    x_flat = x_nchw.reshape(N, F_l, HW).astype(dtype)
    if HW_pad != HW:
        pad = ((0, 0), (0, 0), (0, HW_pad - HW))
        g_flat = jnp.pad(g_flat, pad)
        x_flat = jnp.pad(x_flat, pad)

    # Biases are dropped: InstanceNorm cancels them exactly.
    wg = params["wg"].astype(dtype)
    wx = params["wx"].astype(dtype)
    wpsi = params["wpsi"].astype(dtype)

    kind = _tpu_device_kind()
    two_cores = "v7" in kind            # v7x: 2 TensorCores per chip
    num_blocks = 2 if (two_cores and N >= 2 and N % 2 == 0) else 1
    vmem_limit_bytes = (48 << 20) if (two_cores or not kind) else (100 << 20)

    out = _attention_block_call(
        g_flat, x_flat, wg, wx, wpsi,
        num_blocks=num_blocks, hw_valid=HW, vmem_limit_bytes=vmem_limit_bytes)

    return out[:, :, :HW].reshape(N, F_l, H, W)


def init_attention_block_params(key, F_g, F_l, F_int, scale=0.1):
    """Conv2d 1x1 weights stored as (Cout, Cin); wpsi as (F_int, 1).

    Biases are kept in the param dict for module faithfulness but are not
    consumed by the kernel (InstanceNorm cancels them).
    """
    ks = jax.random.split(key, 6)
    return {
        "wg": scale * jax.random.normal(ks[0], (F_int, F_g), jnp.float32),
        "bg": scale * jax.random.normal(ks[1], (F_int, 1), jnp.float32),
        "wx": scale * jax.random.normal(ks[2], (F_int, F_l), jnp.float32),
        "bx": scale * jax.random.normal(ks[3], (F_int, 1), jnp.float32),
        "wpsi": scale * jax.random.normal(ks[4], (F_int, 1), jnp.float32),
        "bpsi": scale * jax.random.normal(ks[5], (1, 1), jnp.float32),
    }


def attention_block_reference(g_nchw, x_nchw, params, eps=_EPS):
    """Pure-JAX reference matching the PyTorch module semantics (with biases)."""
    def conv1x1(t, w, b):
        return jnp.einsum("oc,nchw->nohw", w, t) + b[None, :, None, None]

    def inorm(t):
        mean = jnp.mean(t, axis=(2, 3), keepdims=True)
        var = jnp.mean((t - mean) ** 2, axis=(2, 3), keepdims=True)
        return (t - mean) * jax.lax.rsqrt(var + eps)

    g1 = inorm(conv1x1(g_nchw, params["wg"], params["bg"][:, 0]))
    x1 = inorm(conv1x1(x_nchw, params["wx"], params["bx"][:, 0]))
    p = jnp.maximum(g1 + x1, 0.0)
    psi = inorm(conv1x1(p, params["wpsi"].T, params["bpsi"][:, 0]))
    psi = jax.nn.sigmoid(psi)
    return x_nchw * psi


if __name__ == "__main__":
    N, F_g, F_l, F_int, H, W = 2, 4, 4, 8, 16, 16

    key = jax.random.PRNGKey(0)
    kg, kx, kp = jax.random.split(key, 3)
    g = jax.random.normal(kg, (N, F_g, H, W), jnp.float32)
    x = jax.random.normal(kx, (N, F_l, H, W), jnp.float32)
    params = init_attention_block_params(kp, F_g, F_l, F_int)

    # f32 path: tight check against the pure-JAX reference.
    out = attention_block_forward(g, x, params)
    jax.block_until_ready(out)
    ref = attention_block_reference(g, x, params)
    assert out.shape == (N, F_l, H, W), out.shape
    assert bool(jnp.all(jnp.isfinite(out)))
    assert bool(jnp.allclose(out, ref, rtol=1e-4, atol=1e-4)), \
        float(jnp.max(jnp.abs(out - ref)))

    # bf16-storage path (halves HBM traffic at production sizes; statistics
    # and gating math stay in f32 inside the kernel). Compare against the
    # reference evaluated on the bf16-quantized inputs.
    out_bf16 = attention_block_forward(g, x, params, storage_dtype=jnp.bfloat16)
    jax.block_until_ready(out_bf16)
    g_q = g.astype(jnp.bfloat16).astype(jnp.float32)
    x_q = x.astype(jnp.bfloat16).astype(jnp.float32)
    params_q = {k: v.astype(jnp.bfloat16).astype(jnp.float32)
                for k, v in params.items()}
    ref_q = attention_block_reference(g_q, x_q, params_q)
    assert out_bf16.dtype == jnp.bfloat16
    assert bool(jnp.all(jnp.isfinite(out_bf16.astype(jnp.float32))))
    assert bool(jnp.allclose(out_bf16.astype(jnp.float32), ref_q,
                             rtol=5e-2, atol=5e-2)), \
        float(jnp.max(jnp.abs(out_bf16.astype(jnp.float32) - ref_q)))

    print("KERNEL_OK")
</pallas_src>

<mosaic_0001>
module attributes {stable_mosaic.version = 11 : i64} {
  func.func @_attention_block_kernel(%arg0: i32, %arg1: memref<2x4x256xf32, #tpu.memory_space<vmem>>, %arg2: memref<2x4x256xf32, #tpu.memory_space<vmem>>, %arg3: memref<8x4xf32, #tpu.memory_space<vmem>>, %arg4: memref<8x4xf32, #tpu.memory_space<vmem>>, %arg5: memref<8x1xf32, #tpu.memory_space<vmem>>, %arg6: memref<2x4x256xf32, #tpu.memory_space<vmem>>) attributes {dimension_semantics = [#tpu.dimension_semantics<parallel>], iteration_bounds = array<i64: 1>, scalar_prefetch = 0 : i64, scratch_operands = 0 : i64, tpu.core_type = #tpu.core_type<tc>, window_params = [{transform_indices = @transform_0, window_bounds = array<i64: 2, 4, 256>}, {transform_indices = @transform_1, window_bounds = array<i64: 2, 4, 256>}, {pipeline_mode = #tpu.pipeline_mode<synchronous>, transform_indices = @transform_2, window_bounds = array<i64: 8, 4>}, {pipeline_mode = #tpu.pipeline_mode<synchronous>, transform_indices = @transform_3, window_bounds = array<i64: 8, 4>}, {pipeline_mode = #tpu.pipeline_mode<synchronous>, transform_indices = @transform_4, window_bounds = array<i64: 8, 1>}, {transform_indices = @transform_5, window_bounds = array<i64: 2, 4, 256>}]} {
    %c0 = arith.constant 0 : index
    %c0_0 = arith.constant 0 : index
    %c0_1 = arith.constant 0 : index
    %0 = vector.load %arg1[%c0, %c0_0, %c0_1] : memref<2x4x256xf32, #tpu.memory_space<vmem>>, vector<2x4x256xf32>
    %c0_2 = arith.constant 0 : index
    %c0_3 = arith.constant 0 : index
    %c0_4 = arith.constant 0 : index
    %1 = vector.load %arg2[%c0_2, %c0_3, %c0_4] : memref<2x4x256xf32, #tpu.memory_space<vmem>>, vector<2x4x256xf32>
    %c0_5 = arith.constant 0 : index
    %c0_6 = arith.constant 0 : index
    %2 = vector.load %arg3[%c0_5, %c0_6] : memref<8x4xf32, #tpu.memory_space<vmem>>, vector<8x4xf32>
    %3 = vector.extract_strided_slice %2 {offsets = [0, 0], sizes = [8, 1], strides = [1, 1]} : vector<8x4xf32> to vector<8x1xf32>
    %4 = vector.shape_cast %3 : vector<8x1xf32> to vector<1x8x1xf32>
    %5 = vector.extract_strided_slice %0 {offsets = [0, 0, 0], sizes = [2, 1, 256], strides = [1, 1, 1]} : vector<2x4x256xf32> to vector<2x1x256xf32>
    %6 = vector.broadcast %4 : vector<1x8x1xf32> to vector<2x8x256xf32>
    %7 = vector.broadcast %5 : vector<2x1x256xf32> to vector<2x8x256xf32>
    %8 = arith.mulf %6, %7 : vector<2x8x256xf32>
    %9 = vector.extract_strided_slice %2 {offsets = [0, 1], sizes = [8, 1], strides = [1, 1]} : vector<8x4xf32> to vector<8x1xf32>
    %10 = vector.shape_cast %9 : vector<8x1xf32> to vector<1x8x1xf32>
    %11 = vector.extract_strided_slice %0 {offsets = [0, 1, 0], sizes = [2, 1, 256], strides = [1, 1, 1]} : vector<2x4x256xf32> to vector<2x1x256xf32>
    %12 = vector.broadcast %10 : vector<1x8x1xf32> to vector<2x8x256xf32>
    %13 = vector.broadcast %11 : vector<2x1x256xf32> to vector<2x8x256xf32>
    %14 = arith.mulf %12, %13 : vector<2x8x256xf32>
    %15 = arith.addf %8, %14 : vector<2x8x256xf32>
    %16 = vector.extract_strided_slice %2 {offsets = [0, 2], sizes = [8, 1], strides = [1, 1]} : vector<8x4xf32> to vector<8x1xf32>
    %17 = vector.shape_cast %16 : vector<8x1xf32> to vector<1x8x1xf32>
    %18 = vector.extract_strided_slice %0 {offsets = [0, 2, 0], sizes = [2, 1, 256], strides = [1, 1, 1]} : vector<2x4x256xf32> to vector<2x1x256xf32>
    %19 = vector.broadcast %17 : vector<1x8x1xf32> to vector<2x8x256xf32>
    %20 = vector.broadcast %18 : vector<2x1x256xf32> to vector<2x8x256xf32>
    %21 = arith.mulf %19, %20 : vector<2x8x256xf32>
    %22 = arith.addf %15, %21 : vector<2x8x256xf32>
    %23 = vector.extract_strided_slice %2 {offsets = [0, 3], sizes = [8, 1], strides = [1, 1]} : vector<8x4xf32> to vector<8x1xf32>
    %24 = vector.shape_cast %23 : vector<8x1xf32> to vector<1x8x1xf32>
    %25 = vector.extract_strided_slice %0 {offsets = [0, 3, 0], sizes = [2, 1, 256], strides = [1, 1, 1]} : vector<2x4x256xf32> to vector<2x1x256xf32>
    %26 = vector.broadcast %24 : vector<1x8x1xf32> to vector<2x8x256xf32>
    %27 = vector.broadcast %25 : vector<2x1x256xf32> to vector<2x8x256xf32>
    %28 = arith.mulf %26, %27 : vector<2x8x256xf32>
    %29 = arith.addf %22, %28 : vector<2x8x256xf32>
    %cst = arith.constant dense<0.000000e+00> : vector<2x8xf32>
    %30 = vector.multi_reduction <add>, %29, %cst [2] : vector<2x8x256xf32> to vector<2x8xf32>
    %31 = vector.shape_cast %30 : vector<2x8xf32> to vector<2x8x1xf32>
    %cst_7 = arith.constant 2.560000e+02 : f32
    %32 = vector.broadcast %cst_7 : f32 to vector<2x8x1xf32>
    %33 = arith.divf %31, %32 : vector<2x8x1xf32>
    %34 = vector.broadcast %33 : vector<2x8x1xf32> to vector<2x8x256xf32>
    %35 = arith.subf %29, %34 : vector<2x8x256xf32>
    %36 = arith.mulf %35, %35 : vector<2x8x256xf32>
    %cst_8 = arith.constant dense<0.000000e+00> : vector<2x8xf32>
    %37 = vector.multi_reduction <add>, %36, %cst_8 [2] : vector<2x8x256xf32> to vector<2x8xf32>
    %38 = vector.shape_cast %37 : vector<2x8xf32> to vector<2x8x1xf32>
    %cst_9 = arith.constant 2.560000e+02 : f32
    %39 = vector.broadcast %cst_9 : f32 to vector<2x8x1xf32>
    %40 = arith.divf %38, %39 : vector<2x8x1xf32>
    %cst_10 = arith.constant 9.99999974E-6 : f32
    %41 = vector.broadcast %cst_10 : f32 to vector<2x8x1xf32>
    %42 = arith.addf %40, %41 : vector<2x8x1xf32>
    %43 = math.rsqrt %42 : vector<2x8x1xf32>
    %44 = vector.broadcast %43 : vector<2x8x1xf32> to vector<2x8x256xf32>
    %45 = arith.mulf %35, %44 : vector<2x8x256xf32>
    %c0_11 = arith.constant 0 : index
    %c0_12 = arith.constant 0 : index
    %46 = vector.load %arg4[%c0_11, %c0_12] : memref<8x4xf32, #tpu.memory_space<vmem>>, vector<8x4xf32>
    %47 = vector.extract_strided_slice %46 {offsets = [0, 0], sizes = [8, 1], strides = [1, 1]} : vector<8x4xf32> to vector<8x1xf32>
    %48 = vector.shape_cast %47 : vector<8x1xf32> to vector<1x8x1xf32>
    %49 = vector.extract_strided_slice %1 {offsets = [0, 0, 0], sizes = [2, 1, 256], strides = [1, 1, 1]} : vector<2x4x256xf32> to vector<2x1x256xf32>
    %50 = vector.broadcast %48 : vector<1x8x1xf32> to vector<2x8x256xf32>
    %51 = vector.broadcast %49 : vector<2x1x256xf32> to vector<2x8x256xf32>
    %52 = arith.mulf %50, %51 : vector<2x8x256xf32>
    %53 = vector.extract_strided_slice %46 {offsets = [0, 1], sizes = [8, 1], strides = [1, 1]} : vector<8x4xf32> to vector<8x1xf32>
    %54 = vector.shape_cast %53 : vector<8x1xf32> to vector<1x8x1xf32>
    %55 = vector.extract_strided_slice %1 {offsets = [0, 1, 0], sizes = [2, 1, 256], strides = [1, 1, 1]} : vector<2x4x256xf32> to vector<2x1x256xf32>
    %56 = vector.broadcast %54 : vector<1x8x1xf32> to vector<2x8x256xf32>
    %57 = vector.broadcast %55 : vector<2x1x256xf32> to vector<2x8x256xf32>
    %58 = arith.mulf %56, %57 : vector<2x8x256xf32>
    %59 = arith.addf %52, %58 : vector<2x8x256xf32>
    %60 = vector.extract_strided_slice %46 {offsets = [0, 2], sizes = [8, 1], strides = [1, 1]} : vector<8x4xf32> to vector<8x1xf32>
    %61 = vector.shape_cast %60 : vector<8x1xf32> to vector<1x8x1xf32>
    %62 = vector.extract_strided_slice %1 {offsets = [0, 2, 0], sizes = [2, 1, 256], strides = [1, 1, 1]} : vector<2x4x256xf32> to vector<2x1x256xf32>
    %63 = vector.broadcast %61 : vector<1x8x1xf32> to vector<2x8x256xf32>
    %64 = vector.broadcast %62 : vector<2x1x256xf32> to vector<2x8x256xf32>
    %65 = arith.mulf %63, %64 : vector<2x8x256xf32>
    %66 = arith.addf %59, %65 : vector<2x8x256xf32>
    %67 = vector.extract_strided_slice %46 {offsets = [0, 3], sizes = [8, 1], strides = [1, 1]} : vector<8x4xf32> to vector<8x1xf32>
    %68 = vector.shape_cast %67 : vector<8x1xf32> to vector<1x8x1xf32>
    %69 = vector.extract_strided_slice %1 {offsets = [0, 3, 0], sizes = [2, 1, 256], strides = [1, 1, 1]} : vector<2x4x256xf32> to vector<2x1x256xf32>
    %70 = vector.broadcast %68 : vector<1x8x1xf32> to vector<2x8x256xf32>
    %71 = vector.broadcast %69 : vector<2x1x256xf32> to vector<2x8x256xf32>
    %72 = arith.mulf %70, %71 : vector<2x8x256xf32>
    %73 = arith.addf %66, %72 : vector<2x8x256xf32>
    %cst_13 = arith.constant dense<0.000000e+00> : vector<2x8xf32>
    %74 = vector.multi_reduction <add>, %73, %cst_13 [2] : vector<2x8x256xf32> to vector<2x8xf32>
    %75 = vector.shape_cast %74 : vector<2x8xf32> to vector<2x8x1xf32>
    %cst_14 = arith.constant 2.560000e+02 : f32
    %76 = vector.broadcast %cst_14 : f32 to vector<2x8x1xf32>
    %77 = arith.divf %75, %76 : vector<2x8x1xf32>
    %78 = vector.broadcast %77 : vector<2x8x1xf32> to vector<2x8x256xf32>
    %79 = arith.subf %73, %78 : vector<2x8x256xf32>
    %80 = arith.mulf %79, %79 : vector<2x8x256xf32>
    %cst_15 = arith.constant dense<0.000000e+00> : vector<2x8xf32>
    %81 = vector.multi_reduction <add>, %80, %cst_15 [2] : vector<2x8x256xf32> to vector<2x8xf32>
    %82 = vector.shape_cast %81 : vector<2x8xf32> to vector<2x8x1xf32>
    %cst_16 = arith.constant 2.560000e+02 : f32
    %83 = vector.broadcast %cst_16 : f32 to vector<2x8x1xf32>
    %84 = arith.divf %82, %83 : vector<2x8x1xf32>
    %cst_17 = arith.constant 9.99999974E-6 : f32
    %85 = vector.broadcast %cst_17 : f32 to vector<2x8x1xf32>
    %86 = arith.addf %84, %85 : vector<2x8x1xf32>
    %87 = math.rsqrt %86 : vector<2x8x1xf32>
    %88 = vector.broadcast %87 : vector<2x8x1xf32> to vector<2x8x256xf32>
    %89 = arith.mulf %79, %88 : vector<2x8x256xf32>
    %90 = arith.addf %45, %89 : vector<2x8x256xf32>
    %cst_18 = arith.constant 0.000000e+00 : f32
    %91 = vector.broadcast %cst_18 : f32 to vector<2x8x256xf32>
    %92 = arith.maximumf %90, %91 : vector<2x8x256xf32>
    %c0_19 = arith.constant 0 : index
    %c0_20 = arith.constant 0 : index
    %93 = vector.load %arg5[%c0_19, %c0_20] : memref<8x1xf32, #tpu.memory_space<vmem>>, vector<8x1xf32>
    %94 = vector.shape_cast %93 : vector<8x1xf32> to vector<1x8x1xf32>
    %95 = vector.broadcast %94 : vector<1x8x1xf32> to vector<2x8x256xf32>
    %96 = arith.mulf %95, %92 : vector<2x8x256xf32>
    %cst_21 = arith.constant dense<0.000000e+00> : vector<2x256xf32>
    %97 = vector.multi_reduction <add>, %96, %cst_21 [1] : vector<2x8x256xf32> to vector<2x256xf32>
    %98 = vector.shape_cast %97 : vector<2x256xf32> to vector<2x1x256xf32>
    %cst_22 = arith.constant dense<0.000000e+00> : vector<2x1xf32>
    %99 = vector.multi_reduction <add>, %98, %cst_22 [2] : vector<2x1x256xf32> to vector<2x1xf32>
    %100 = vector.shape_cast %99 : vector<2x1xf32> to vector<2x1x1xf32>
    %cst_23 = arith.constant 2.560000e+02 : f32
    %101 = vector.broadcast %cst_23 : f32 to vector<2x1x1xf32>
    %102 = arith.divf %100, %101 : vector<2x1x1xf32>
    %103 = vector.broadcast %102 : vector<2x1x1xf32> to vector<2x1x256xf32>
    %104 = arith.subf %98, %103 : vector<2x1x256xf32>
    %105 = arith.mulf %104, %104 : vector<2x1x256xf32>
    %cst_24 = arith.constant dense<0.000000e+00> : vector<2x1xf32>
    %106 = vector.multi_reduction <add>, %105, %cst_24 [2] : vector<2x1x256xf32> to vector<2x1xf32>
    %107 = vector.shape_cast %106 : vector<2x1xf32> to vector<2x1x1xf32>
    %cst_25 = arith.constant 2.560000e+02 : f32
    %108 = vector.broadcast %cst_25 : f32 to vector<2x1x1xf32>
    %109 = arith.divf %107, %108 : vector<2x1x1xf32>
    %cst_26 = arith.constant 9.99999974E-6 : f32
    %110 = vector.broadcast %cst_26 : f32 to vector<2x1x1xf32>
    %111 = arith.addf %109, %110 : vector<2x1x1xf32>
    %112 = math.rsqrt %111 : vector<2x1x1xf32>
    %113 = vector.broadcast %112 : vector<2x1x1xf32> to vector<2x1x256xf32>
    %114 = arith.mulf %104, %113 : vector<2x1x256xf32>
    %115 = arith.negf %114 : vector<2x1x256xf32>
    %116 = math.exp %115 : vector<2x1x256xf32>
    %cst_27 = arith.constant 1.000000e+00 : f32
    %117 = vector.broadcast %cst_27 : f32 to vector<2x1x256xf32>
    %118 = arith.addf %117, %116 : vector<2x1x256xf32>
    %119 = arith.divf %117, %118 : vector<2x1x256xf32>
    %120 = vector.broadcast %119 : vector<2x1x256xf32> to vector<2x4x256xf32>
    %121 = arith.mulf %1, %120 : vector<2x4x256xf32>
    %c0_28 = arith.constant 0 : index
    %c0_29 = arith.constant 0 : index
    %c0_30 = arith.constant 0 : index
    %122 = vector.load %arg6[%c0_28, %c0_29, %c0_30] : memref<2x4x256xf32, #tpu.memory_space<vmem>>, vector<2x4x256xf32>
    tpu.vector_store %arg6[%c0_28, %c0_29, %c0_30], %121 {strides = array<i32>} : memref<2x4x256xf32, #tpu.memory_space<vmem>>, vector<2x4x256xf32>,
    return
  }
  func.func @transform_0(%arg0: i32) -> (i32, i32, i32) {
    %c0_i32 = arith.constant 0 : i32
    %c0_i32_0 = arith.constant 0 : i32
    %c0_i32_1 = arith.constant 0 : i32
    return %arg0, %c0_i32, %c0_i32_0 : i32, i32, i32
  }
  func.func @transform_1(%arg0: i32) -> (i32, i32, i32) {
    %c0_i32 = arith.constant 0 : i32
    %c0_i32_0 = arith.constant 0 : i32
    %c0_i32_1 = arith.constant 0 : i32
    return %arg0, %c0_i32, %c0_i32_0 : i32, i32, i32
  }
  func.func @transform_2(%arg0: i32) -> (i32, i32) {
    %c0_i32 = arith.constant 0 : i32
    %c0_i32_0 = arith.constant 0 : i32
    %c0_i32_1 = arith.constant 0 : i32
    return %c0_i32, %c0_i32_0 : i32, i32
  }
  func.func @transform_3(%arg0: i32) -> (i32, i32) {
    %c0_i32 = arith.constant 0 : i32
    %c0_i32_0 = arith.constant 0 : i32
    %c0_i32_1 = arith.constant 0 : i32
    return %c0_i32, %c0_i32_0 : i32, i32
  }
  func.func @transform_4(%arg0: i32) -> (i32, i32) {
    %c0_i32 = arith.constant 0 : i32
    %c0_i32_0 = arith.constant 0 : i32
    %c0_i32_1 = arith.constant 0 : i32
    return %c0_i32, %c0_i32_0 : i32, i32
  }
  func.func @transform_5(%arg0: i32) -> (i32, i32, i32) {
    %c0_i32 = arith.constant 0 : i32
    %c0_i32_0 = arith.constant 0 : i32
    %c0_i32_1 = arith.constant 0 : i32
    return %arg0, %c0_i32, %c0_i32_0 : i32, i32, i32
  }
}

</mosaic_0001>

<bundles_post_ra>
// kernel: _attention_block_call.1
= control target key start
LH: loop header
LB: loop body
LE: loop exit
PB: predicated region body
PF: predicated region fallthrough
CT: control target
= control target key end

     0   :  { %10 = vsyncpa [#allocation3], 0  ;;  %s850_s0 = inlined_call_operand.vmem [shape: f32[2,4,256], index: 0, kind: input, shape index: {}]   ;;  %s851_s1 = inlined_call_operand.hbm [shape: f32[2,4,256], index: 1, kind: input, shape index: {}]   ;;  %s852_s2 = inlined_call_operand.vmem [shape: f32[8,4], index: 2, kind: input, shape index: {}]   ;;  %s853_s3 = inlined_call_operand.vmem [shape: f32[8,4], index: 3, kind: input, shape index: {}]   ;;  %s854_s4 = inlined_call_operand.vmem [shape: f32[8,1], index: 4, kind: input, shape index: {}]   ;;  %s855_s5 = inlined_call_operand.hbm [shape: f32[2,4,256], index: 5, kind: output, shape index: {}]  }
   0x1   :  { %11 = vsyncpa [#allocation4], 0  ;;  %s18_s20 = sshll.u32 %s851_s1, 4  ;;  %s646_s21 = smov [#allocation2]   ;;  %s19_s20 = int_to_ptr.hbm [resolvable:$true] %s18_s20 }
   0x2   :  { %s20_s22 = sshll.u32 %s646_s21, 4  ;;  %s647_s23 = smov 128   ;;  %s21_s22 = int_to_ptr.vmem [resolvable:$true] %s20_s22 }
   0x3   :  { %s648_s24 = smov 8  }
   0x4   :  { %26 = dma.hbm_to_vmem [thread:$0]  %s19_s20, 256, %s21_s22, [#allocation3], %s647_s23, %s647_s23, %s648_s24  }
   0x5   :  { %642 = dma.done.wait [#allocation3], 256  }
   0x6   :  { %643 = vsyncadd [#allocation3], 4294967040  ;;  %v649_v0 = vmov 0   ;;  %v650_v1 = vmov 2   ;;  %v194_v2 = vld [vmem:[%s853_s3] sm:$0xff]  ;;  %v651_v4 = vmov 1  }
   0x7   :  { %557 = vset.pattern.permute.xlu1 %v649_v0  ;;  %555 = vset.pattern.permute.xlu0 %v649_v0  ;;  %v41_v3 = vld [vmem:[%s852_s2] sm:$0xff]  ;;  %v652_v5 = vmov 3   ;;  %v707_v8 = vld [vmem:[%s850_s0 + $0x8] sm:$0xff]  ;;  %s529_s9 = sshll.u32 %s855_s5, 4  ;;  %s530_s9 = int_to_ptr.hbm [resolvable:$true] %s529_s9 }
   0x8   :  { %559 = vset.pattern.permute.xlu2 %v650_v1  ;;  %197 = vperm.xlu1 %557, %v194_v2   ;;  %v700_v6 = vld [vmem:[%s850_s0] sm:$0xff]  ;;  %v712_v11 = vld [vmem:[#allocation2 + $0x8] sm:$0xff]  ;;  %v95_v13 = vperm.slane %v707_v8, 2  ;;  %v96_v14 = vperm.slane %v707_v8, 6  ;;  %v51_v36 = vperm.slane %v707_v8, 0  ;;  %v52_v37 = vperm.slane %v707_v8, 4 }
   0x9   :  { %44 = vperm.xlu0 %555, %v41_v3   ;;  %90 = vperm.xlu2 %559, %v41_v3   ;;  %v709_v9 = vld [vmem:[#allocation2] sm:$0xff]  ;;  %v93_v10 = vperm.slane %v700_v6, 2  ;;  %v94_v12 = vperm.slane %v700_v6, 6  ;;  %v204_v17 = vperm.slane %v712_v11, 0  ;;  %v205_v18 = vperm.slane %v712_v11, 4 }
   0xa   :  { %v202_v15 = vperm.slane %v709_v9, 0  ;;  %v203_v16 = vperm.slane %v709_v9, 4  ;;  %v246_v19 = vperm.slane %v709_v9, 2  ;;  %v247_v21 = vperm.slane %v709_v9, 6 }
   0xb   :  { %v101_v20 = vperm.slane %v93_v10, 2  ;;  %v102_v22 = vperm.slane %v94_v12, 2  ;;  %v103_v23 = vperm.slane %v95_v13, 2  ;;  %v248_v24 = vperm.slane %v712_v11, 2 }
   0xc   :  { %v249_v25 = vperm.slane %v712_v11, 6  ;;  %v725_v26 = vperm.slane %v96_v14, 2  ;;  %v210_v27 = vperm.slane %v202_v15, 0  ;;  %v49_v28 = vperm.slane %v700_v6, 0 }
   0xd   :  { %v50_v29 = vperm.slane %v700_v6, 4  ;;  %v211_v30 = vperm.slane %v203_v16, 0  ;;  %v212_v31 = vperm.slane %v204_v17, 0  ;;  %v213_v32 = vperm.slane %v205_v18, 0 }
   0xe   :  { %v254_v33 = vperm.slane %v246_v19, 2  ;;  %v255_v35 = vperm.slane %v247_v21, 2  ;;  %v222_v38 = vperm.slane %v709_v9, 1  ;;  %v734_v39 = vperm.slane %v248_v24, 2 }
   0xf   :  { %v736_v40 = vperm.slane %v249_v25, 2  ;;  %v223_v41 = vperm.slane %v709_v9, 5  ;;  %v224_v42 = vperm.slane %v712_v11, 1  ;;  %v57_v43 = vperm.slane %v49_v28, 0 }
  0x10   :  { %558 = vset.pattern.permute.xlu1 %v651_v4  ;;  %v58_v44 = vperm.slane %v50_v29, 0  ;;  %v225_v45 = vperm.slane %v712_v11, 5  ;;  %v69_v46 = vperm.slane %v700_v6, 1  ;;  %v70_v49 = vperm.slane %v700_v6, 5 }
  0x11   :  { %556 = vset.pattern.permute.xlu0 %v651_v4  ;;  %219 = vperm.xlu1 %558, %v194_v2   ;;  %v71_v50 = vperm.slane %v707_v8, 1  ;;  %v270_v51 = vperm.slane %v709_v9, 3  ;;  %v271_v52 = vperm.slane %v709_v9, 7  ;;  %v59_v53 = vperm.slane %v51_v36, 0 }
  0x12   :  { %66 = vperm.xlu0 %556, %v41_v3   ;;  %243 = vperm.xlu2 %559, %v194_v2   ;;  %v60_v54 = vperm.slane %v52_v37, 0  ;;  %v230_v55 = vperm.slane %v222_v38, 1  ;;  %v72_v56 = vperm.slane %v707_v8, 5  ;;  %v231_v57 = vperm.slane %v223_v41, 1 }
  0x13   :  { %v232_v58 = vperm.slane %v224_v42, 1  ;;  %v272_v59 = vperm.slane %v712_v11, 3  ;;  %v273_v60 = vperm.slane %v712_v11, 7  ;;  %v233_v61 = vperm.slane %v225_v45, 1 }
  0x14   :  { %v77_v62 = vperm.slane %v69_v46, 1  ;;  %v119_v63 = vperm.slane %v707_v8, 3  ;;  %v78_v1 = vperm.slane %v70_v49, 1  ;;  %v279_v4 = vperm.slane %v271_v52, 3 }
  0x15   :  { %v80_v13 = vperm.slane %v72_v56, 1  ;;  %v117_v15 = vperm.slane %v700_v6, 3  ;;  %v118_v16 = vperm.slane %v700_v6, 7  ;;  %v280_v17 = vperm.slane %v272_v59, 3 }
  0x16   :  { %v281_v18 = vperm.slane %v273_v60, 3  ;;  %v127_v21 = vperm.slane %v119_v63, 3 }
  0x19   :  { %560 = vset.pattern.permute.xlu1 %v652_v5 }
  0x1a   :  { %563 = vset.pattern.permute.xlu0 %v649_v0  ;;  %114 = vperm.xlu1 %560, %v41_v3   ;;  %v278_v3 = vperm.slane %v270_v51, 3 }
  0x1b   :  { %561 = vset.pattern.permute.xlu2 %v652_v5 }
  0x1c   :  { %267 = vperm.xlu2 %561, %v194_v2   ;;  %v79_v2 = vperm.slane %v71_v50, 1 }
  0x22   :  { %562 = vset.pattern.permute.xlu1 %v649_v0  ;;  %v120_v0 = vperm.slane %v707_v8, 7 }
  0x24   :  { %v128_v24 = vperm.slane %v120_v0, 3 }
  0x63   :  { %v702_v7 = vpop.permute.xlu2 %90 }
  0x64   :  { %v105_v5 = vmul.f32 %v101_v20, %v702_v7  ;;  %v106_v10 = vmul.f32 %v102_v22, %v702_v7  ;;  %v107_v12 = vmul.f32 %v103_v23, %v702_v7 }
  0x6c   :  { %v729_v34 = vpop.permute.xlu2 %243 }
  0x6d   :  { %v258_v8 = vmul.f32 %v254_v33, %v729_v34  ;;  %v259_v19 = vmul.f32 %v255_v35, %v729_v34 }
  0x76   :  { %v268_v14 = vpop.permute.xlu2 %267 }
  0x77   :  { %v282_v28 = vmul.f32 %v278_v3, %v268_v14  ;;  %v283_v22 = vmul.f32 %v279_v4, %v268_v14 }
  0x7a   :  { %v198_v47 = vpop.permute.xlu1 %197 }
  0x7b   :  { %v45_v48 = vpop.permute.xlu0 %44  ;;  %v214_v25 = vmul.f32 %v210_v27, %v198_v47  ;;  %v215_v20 = vmul.f32 %v211_v30, %v198_v47  ;;  %v216_v29 = vmul.f32 %v212_v31, %v198_v47  ;;  %v217_v23 = vmul.f32 %v213_v32, %v198_v47 }
  0x7c   :  { %v63_v36 = vmul.f32 %v59_v53, %v45_v48  ;;  %v64_v37 = vmul.f32 %v60_v54, %v45_v48  ;;  %v61_v51 = vmul.f32 %v57_v43, %v45_v48  ;;  %v62_v52 = vmul.f32 %v58_v44, %v45_v48 }
  0x7d   :  { %v108_v43 = vmul.f32 %v725_v26, %v702_v7 }
  0x83   :  { %v220_v38 = vpop.permute.xlu1 %219 }
  0x84   :  { %v67_v41 = vpop.permute.xlu0 %66  ;;  %v234_v42 = vmul.f32 %v230_v55, %v220_v38  ;;  %v235_v6 = vmul.f32 %v231_v57, %v220_v38  ;;  %v236_v45 = vmul.f32 %v232_v58, %v220_v38  ;;  %v237_v46 = vmul.f32 %v233_v61, %v220_v38 }
  0x85   :  { %v81_v49 = vmul.f32 %v77_v62, %v67_v41  ;;  %v82_v33 = vmul.f32 %v78_v1, %v67_v41  ;;  %v83_v50 = vmul.f32 %v79_v2, %v67_v41  ;;  %v84_v35 = vmul.f32 %v80_v13, %v67_v41 }
  0x86   :  { %v238_v27 = vadd.f32 %v234_v42, %v214_v25  ;;  %v239_v30 = vadd.f32 %v235_v6, %v215_v20  ;;  %v240_v31 = vadd.f32 %v236_v45, %v216_v29  ;;  %v241_v32 = vadd.f32 %v237_v46, %v217_v23 }
  0x87   :  { %v87_v56 = vadd.f32 %v83_v50, %v63_v36  ;;  %v88_v59 = vadd.f32 %v84_v35, %v64_v37  ;;  %v85_v54 = vadd.f32 %v81_v49, %v61_v51  ;;  %v86_v60 = vadd.f32 %v82_v33, %v62_v52 }
  0x88   :  { %v262_v47 = vadd.f32 %v258_v8, %v238_v27  ;;  %v263_v53 = vadd.f32 %v259_v19, %v239_v30  ;;  %v260_v55 = vmul.f32 %v734_v39, %v729_v34  ;;  %v261_v57 = vmul.f32 %v736_v40, %v729_v34 }
  0x89   :  { %v125_v58 = vperm.slane %v117_v15, 3  ;;  %v126_v61 = vperm.slane %v118_v16, 3  ;;  %v284_v62 = vmul.f32 %v280_v17, %v268_v14  ;;  %v111_v63 = vadd.f32 %v107_v12, %v87_v56 }
  0x8a   :  { %v286_v44 = vadd.f32 %v282_v28, %v262_v47  ;;  %v287_v48 = vadd.f32 %v283_v22, %v263_v53  ;;  %v264_v0 = vadd.f32 %v260_v55, %v240_v31  ;;  %v265_v1 = vadd.f32 %v261_v57, %v241_v32 }
  0x8b   :  { %v285_v2 = vmul.f32 %v281_v18, %v268_v14  ;;  %v112_v13 = vadd.f32 %v108_v43, %v88_v59  ;;  %v109_v8 = vadd.f32 %v105_v5, %v85_v54  ;;  %v110_v39 = vadd.f32 %v106_v10, %v86_v60 }
  0x8c   :  { %v115_v3 = vpop.permute.xlu1 %114  ;;  %v290_v4 = vadd.f32 %v287_v48, %v286_v44  ;;  %v288_v20 = vadd.f32 %v284_v62, %v264_v0  ;;  %v653_v18 = vmov 256.0  }
  0x8d   :  { %v131_v19 = vmul.f32 %v127_v21, %v115_v3  ;;  %v132_v25 = vmul.f32 %v128_v24, %v115_v3  ;;  %v129_v34 = vmul.f32 %v125_v58, %v115_v3  ;;  %v130_v40 = vmul.f32 %v126_v61, %v115_v3  ;;  %v348_v61 = vld [vmem:[%s854_s4] sm:$0xff]  ;;  %s654_s4 = smov [#allocation5]  }
  0x8e   :  { %291 = vadd.xlane.f32.xlu2 %v290_v4  ;;  %v289_v17 = vadd.f32 %v285_v2, %v265_v1  ;;  %564 = vrcp.f32 %v653_v18  ;;  %s527_s6 = sshll.u32 %s654_s4, 4  ;;  %s528_s6 = int_to_ptr.vmem [resolvable:$true] %s527_s6 }
  0x8f   :  { %v135_v15 = vadd.f32 %v131_v19, %v111_v63  ;;  %v136_v16 = vadd.f32 %v132_v25, %v112_v13  ;;  %v133_v7 = vadd.f32 %v129_v34, %v109_v8  ;;  %v134_v26 = vadd.f32 %v130_v40, %v110_v39 }
  0x90   :  { %v293_v14 = vadd.f32 %v289_v17, %v288_v20 }
  0x91   :  { %v140_v12 = vadd.f32 %v136_v16, %v135_v15  ;;  %v137_v28 = vadd.f32 %v134_v26, %v133_v7 }
  0x93   :  { %141 = vadd.xlane.f32.xlu1 %v140_v12  ;;  %138 = vadd.xlane.f32.xlu0 %v137_v28 }
  0x94   :  { %v565_v5 = vpop.eup %564 }
  0x95   :  { %v144_v10 = vmul.f32 256.0, %v565_v5  ;;  %vm148_vm0 = vweird.f32 %v565_v5 }
  0x96   :  { %294 = vadd.xlane.f32.xlu2 %v293_v14 }
  0x97   :  { %v145_v21 = vsub.f32 1.0, %v144_v10 }
  0x99   :  { %v146_v24 = vmul.f32 %v565_v5, %v145_v21 }
  0x9b   :  { %v147_v22 = vadd.f32 %v565_v5, %v146_v24 }
  0x9d   :  { %v764_v29 = vsel %vm148_vm0, %v565_v5, %v147_v22 }
 0x101   :  { %v292_v23 = vpop.xlane.xlu2 %291 }
 0x102   :  { %v296_v36 = vmul.f32 %v292_v23, %v764_v29 }
 0x104   :  { %v767_v37 = vsub.f32 %v286_v44, %v296_v36  ;;  %v769_v38 = vsub.f32 %v287_v48, %v296_v36 }
 0x106   :  { %v142_v41 = vpop.xlane.xlu1 %141  ;;  %v139_v42 = vpop.xlane.xlu0 %138  ;;  %v302_v6 = vmul.f32 %v767_v37, %v767_v37  ;;  %v303_v45 = vmul.f32 %v769_v38, %v769_v38 }
 0x107   :  { %v151_v46 = vmul.f32 %v764_v29, %v142_v41  ;;  %v150_v49 = vmul.f32 %v764_v29, %v139_v42 }
 0x108   :  { %v306_v33 = vadd.f32 %v303_v45, %v302_v6 }
 0x109   :  { %v777_v50 = vsub.f32 %v135_v15, %v151_v46  ;;  %v779_v35 = vsub.f32 %v136_v16, %v151_v46  ;;  %v781_v51 = vsub.f32 %v133_v7, %v150_v49  ;;  %v783_v52 = vsub.f32 %v134_v26, %v150_v49  ;;  %v295_v27 = vpop.xlane.xlu2 %294 }
 0x10a   :  { %v297_v30 = vmul.f32 %v295_v27, %v764_v29  ;;  %307 = vadd.xlane.f32.xlu2 %v306_v33 }
 0x10b   :  { %v158_v56 = vmul.f32 %v777_v50, %v777_v50  ;;  %v159_v59 = vmul.f32 %v779_v35, %v779_v35  ;;  %v156_v31 = vmul.f32 %v781_v51, %v781_v51  ;;  %v157_v32 = vmul.f32 %v783_v52, %v783_v52 }
 0x10c   :  { %v794_v47 = vsub.f32 %v288_v20, %v297_v30  ;;  %v796_v53 = vsub.f32 %v289_v17, %v297_v30 }
 0x10d   :  { %v163_v54 = vadd.f32 %v159_v59, %v158_v56  ;;  %v160_v60 = vadd.f32 %v157_v32, %v156_v31 }
 0x10e   :  { %v304_v55 = vmul.f32 %v794_v47, %v794_v47  ;;  %v305_v57 = vmul.f32 %v796_v53, %v796_v53 }
 0x10f   :  { %164 = vadd.xlane.f32.xlu1 %v163_v54  ;;  %161 = vadd.xlane.f32.xlu0 %v160_v60 }
 0x110   :  { %v309_v58 = vadd.f32 %v305_v57, %v304_v55 }
 0x117   :  { %310 = vadd.xlane.f32.xlu0 %v309_v58 }
 0x128   :  { %351 = vperm.xlu1 %562, %v348_v61  }
 0x17d   :  { %v308_v43 = vpop.xlane.xlu2 %307 }
 0x17e   :  { %v312_v44 = vmul.f32 %v308_v43, %v764_v29 }
 0x180   :  { %v314_v48 = vadd.f32 1e-05, %v312_v44 }
 0x182   :  { %566 = vrsqrt.f32 %v314_v48  ;;  %v165_v62 = vpop.xlane.xlu1 %164  ;;  %v162_v63 = vpop.xlane.xlu0 %161  ;;  %vm322_vm2 = vweird.f32 %v314_v48 }
 0x183   :  { %v167_v0 = vmul.f32 %v165_v62, %v764_v29  ;;  %v166_v1 = vmul.f32 %v162_v63, %v764_v29 }
 0x185   :  { %v169_v2 = vadd.f32 1e-05, %v167_v0  ;;  %v168_v3 = vadd.f32 1e-05, %v166_v1 }
 0x187   :  { %568 = vrsqrt.f32 %v169_v2  ;;  %vm176_vm5 = vweird.f32 %v168_v3  ;;  %vm186_vm8 = vweird.f32 %v169_v2 }
 0x188   :  { %v567_v4 = vpop.eup %566  ;;  %570 = vrsqrt.f32 %v168_v3 }
 0x189   :  { %v317_v13 = vmul.f32 %v567_v4, %v314_v48  ;;  %vm323_vm1 = vweird.f32 %v567_v4 }
 0x18a   :  { %v311_v8 = vpop.xlane.xlu0 %310  ;;  %vm324_vm3 = vmor %vm322_vm2, %vm323_vm1 }
 0x18b   :  { %v318_v39 = vmul.f32 %v567_v4, %v317_v13  ;;  %v313_v19 = vmul.f32 %v311_v8, %v764_v29 }
 0x18d   :  { %v569_v25 = vpop.eup %568  ;;  %v319_v34 = vmul.f32 0.5, %v318_v39  ;;  %v315_v40 = vadd.f32 1e-05, %v313_v19 }
 0x18e   :  { %v571_v15 = vpop.eup %570  ;;  %v181_v16 = vmul.f32 %v569_v25, %v169_v2  ;;  %vm187_vm7 = vweird.f32 %v569_v25 }
 0x18f   :  { %v320_v7 = vsub.f32 1.5, %v319_v34  ;;  %v171_v26 = vmul.f32 %v571_v15, %v168_v3  ;;  %572 = vrsqrt.f32 %v315_v40  ;;  %vm177_vm4 = vweird.f32 %v571_v15  ;;  %vm188_vm10 = vmor %vm186_vm8, %vm187_vm7 }
 0x190   :  { %v182_v20 = vmul.f32 %v569_v25, %v181_v16  ;;  %vm178_vm6 = vmor %vm176_vm5, %vm177_vm4  ;;  %vm332_vm11 = vweird.f32 %v315_v40 }
 0x191   :  { %v172_v17 = vmul.f32 %v571_v15, %v171_v26  ;;  %v321_v12 = vmul.f32 %v567_v4, %v320_v7 }
 0x192   :  { %v183_v28 = vmul.f32 0.5, %v182_v20 }
 0x193   :  { %v173_v14 = vmul.f32 0.5, %v172_v17  ;;  %v325_v10 = vsel %vm324_vm3, %v567_v4, %v321_v12 }
 0x194   :  { %v184_v21 = vsub.f32 1.5, %v183_v28  ;;  %v336_v41 = vmul.f32 %v325_v10, %v767_v37  ;;  %v337_v42 = vmul.f32 %v325_v10, %v769_v38 }
 0x195   :  { %v573_v18 = vpop.eup %572  ;;  %v174_v5 = vsub.f32 1.5, %v173_v14 }
 0x196   :  { %v327_v24 = vmul.f32 %v573_v18, %v315_v40  ;;  %v185_v6 = vmul.f32 %v569_v25, %v184_v21  ;;  %vm333_vm9 = vweird.f32 %v573_v18 }
 0x197   :  { %v175_v22 = vmul.f32 %v571_v15, %v174_v5  ;;  %vm334_vm12 = vmor %vm332_vm11, %vm333_vm9  ;;  %vm514_vm9 = vcmask 1043456  }
 0x198   :  { %v328_v23 = vmul.f32 %v573_v18, %v327_v24  ;;  %v189_v59 = vsel %vm188_vm10, %v569_v25, %v185_v6 }
 0x199   :  { %v179_v36 = vsel %vm178_vm6, %v571_v15, %v175_v22 }
 0x19a   :  { %v329_v45 = vmul.f32 0.5, %v328_v23  ;;  %v190_v46 = vmul.f32 %v179_v36, %v781_v51  ;;  %v191_v49 = vmul.f32 %v179_v36, %v783_v52  ;;  %v352_v56 = vpop.permute.xlu1 %351  ;;  %v192_v51 = vmul.f32 %v189_v59, %v777_v50 }
 0x19b   :  { %v193_v52 = vmul.f32 %v189_v59, %v779_v35 }
 0x19c   :  { %v330_v33 = vsub.f32 1.5, %v329_v45  ;;  %v340_v27 = vadd.f32 %v336_v41, %v190_v46  ;;  %v341_v30 = vadd.f32 %v337_v42, %v191_v49 }
 0x19e   :  { %v331_v31 = vmul.f32 %v573_v18, %v330_v33  ;;  %v344_v32 = vmax.f32 %v340_v27, 0.0  ;;  %v345_v37 = vmax.f32 %v341_v30, 0.0 }
 0x1a0   :  { %v335_v38 = vsel %vm334_vm12, %v573_v18, %v331_v31  ;;  %v354_v54 = vmul.f32 %v352_v56, %v344_v32  ;;  %v355_v60 = vmul.f32 %v352_v56, %v345_v37 }
 0x1a1   :  { %v338_v55 = vmul.f32 %v335_v38, %v794_v47  ;;  %v339_v57 = vmul.f32 %v335_v38, %v796_v53 }
 0x1a2   :  { %v358_v58 = vrot.slane %v354_v54, 4  ;;  %v364_v61 = vrot.slane %v355_v60, 4 }
 0x1a3   :  { %v342_v43 = vadd.f32 %v338_v55, %v192_v51  ;;  %v343_v44 = vadd.f32 %v339_v57, %v193_v52 }
 0x1a4   :  { %v359_v48 = vadd.f32 %v358_v58, %v354_v54  ;;  %v365_v62 = vadd.f32 %v364_v61, %v355_v60 }
 0x1a5   :  { %v346_v63 = vmax.f32 %v342_v43, 0.0  ;;  %v347_v0 = vmax.f32 %v343_v44, 0.0 }
 0x1a6   :  { %v360_v1 = vrot.slane %v359_v48, 2  ;;  %v366_v2 = vrot.slane %v365_v62, 2 }
 0x1a7   :  { %v356_v3 = vmul.f32 %v352_v56, %v346_v63  ;;  %v357_v4 = vmul.f32 %v352_v56, %v347_v0 }
 0x1a8   :  { %v361_v13 = vadd.f32 %v360_v1, %v359_v48  ;;  %v367_v50 = vadd.f32 %v366_v2, %v365_v62 }
 0x1a9   :  { %v370_v8 = vrot.slane %v356_v3, 4  ;;  %v376_v35 = vrot.slane %v357_v4, 4 }
 0x1aa   :  { %v362_v39 = vrot.slane %v361_v13, 1  ;;  %v368_v47 = vrot.slane %v367_v50, 1 }
 0x1ab   :  { %v371_v19 = vadd.f32 %v370_v8, %v356_v3  ;;  %v377_v53 = vadd.f32 %v376_v35, %v357_v4 }
 0x1ac   :  { %v363_v25 = vadd.f32 %v362_v39, %v361_v13  ;;  %v369_v34 = vadd.f32 %v368_v47, %v367_v50 }
 0x1ad   :  { %v372_v40 = vrot.slane %v371_v19, 2  ;;  %v378_v15 = vrot.slane %v377_v53, 2 }
 0x1ae   :  { %v382_v16 = vadd.f32 %v369_v34, %v363_v25 }
 0x1af   :  { %v373_v7 = vadd.f32 %v372_v40, %v371_v19  ;;  %v379_v26 = vadd.f32 %v378_v15, %v377_v53 }
 0x1b0   :  { %383 = vadd.xlane.f32.xlu2 %v382_v16 }
 0x1b1   :  { %v374_v20 = vrot.slane %v373_v7, 1  ;;  %v380_v17 = vrot.slane %v379_v26, 1 }
 0x1b3   :  { %v375_v12 = vadd.f32 %v374_v20, %v373_v7  ;;  %v381_v28 = vadd.f32 %v380_v17, %v379_v26 }
 0x1b5   :  { %v385_v14 = vadd.f32 %v381_v28, %v375_v12 }
 0x1b7   :  { %386 = vadd.xlane.f32.xlu0 %v385_v14 }
 0x223   :  { %v384_v18 = vpop.xlane.xlu2 %383 }
 0x224   :  { %v388_v5 = vmul.f32 %v384_v18, %v764_v29 }
 0x226   :  { %v390_v10 = vsub.f32 %v363_v25, %v388_v5  ;;  %v391_v21 = vsub.f32 %v369_v34, %v388_v5 }
 0x228   :  { %v394_v24 = vmul.f32 %v390_v10, %v390_v10  ;;  %v395_v22 = vmul.f32 %v391_v21, %v391_v21 }
 0x22a   :  { %v387_v23 = vpop.xlane.xlu0 %386  ;;  %v398_v36 = vadd.f32 %v395_v22, %v394_v24 }
 0x22b   :  { %v389_v41 = vmul.f32 %v387_v23, %v764_v29 }
 0x22c   :  { %399 = vadd.xlane.f32.xlu2 %v398_v36 }
 0x22d   :  { %v392_v42 = vsub.f32 %v375_v12, %v389_v41  ;;  %v393_v6 = vsub.f32 %v381_v28, %v389_v41 }
 0x22f   :  { %v396_v45 = vmul.f32 %v392_v42, %v392_v42  ;;  %v397_v46 = vmul.f32 %v393_v6, %v393_v6 }
 0x231   :  { %v401_v49 = vadd.f32 %v397_v46, %v396_v45 }
 0x233   :  { %402 = vadd.xlane.f32.xlu0 %v401_v49 }
 0x29f   :  { %v400_v33 = vpop.xlane.xlu2 %399 }
 0x2a0   :  { %v404_v27 = vmul.f32 %v400_v33, %v764_v29 }
 0x2a2   :  { %v406_v30 = vadd.f32 1e-05, %v404_v27 }
 0x2a4   :  { %574 = vrsqrt.f32 %v406_v30  ;;  %vm414_vm14 = vweird.f32 %v406_v30 }
 0x2a6   :  { %v403_v56 = vpop.xlane.xlu0 %402 }
 0x2a7   :  { %v405_v59 = vmul.f32 %v403_v56, %v764_v29 }
 0x2a9   :  { %v407_v31 = vadd.f32 1e-05, %v405_v59 }
 0x2aa   :  { %v575_v32 = vpop.eup %574 }
 0x2ab   :  { %v409_v37 = vmul.f32 %v575_v32, %v406_v30  ;;  %576 = vrsqrt.f32 %v407_v31  ;;  %vm415_vm13 = vweird.f32 %v575_v32  ;;  %vm424_vm1 = vweird.f32 %v407_v31 }
 0x2ac   :  { %vm416_vm15 = vmor %vm414_vm14, %vm415_vm13 }
 0x2ad   :  { %v410_v38 = vmul.f32 %v575_v32, %v409_v37 }
 0x2af   :  { %v411_v54 = vmul.f32 0.5, %v410_v38 }
 0x2b1   :  { %v577_v60 = vpop.eup %576  ;;  %v412_v51 = vsub.f32 1.5, %v411_v54 }
 0x2b2   :  { %v419_v52 = vmul.f32 %v577_v60, %v407_v31  ;;  %vm425_vm0 = vweird.f32 %v577_v60 }
 0x2b3   :  { %v413_v55 = vmul.f32 %v575_v32, %v412_v51  ;;  %vm426_vm2 = vmor %vm424_vm1, %vm425_vm0 }
 0x2b4   :  { %v420_v57 = vmul.f32 %v577_v60, %v419_v52 }
 0x2b5   :  { %v417_v58 = vsel %vm416_vm15, %v575_v32, %v413_v55 }
 0x2b6   :  { %v428_v61 = vmul.f32 %v417_v58, %v390_v10  ;;  %v429_v43 = vmul.f32 %v417_v58, %v391_v21  ;;  %v421_v44 = vmul.f32 0.5, %v420_v57 }
 0x2b8   :  { %v542_v48 = vmul.f32 -1.442695, %v428_v61  ;;  %v543_v29 = vmul.f32 -1.442695, %v429_v43  ;;  %v422_v62 = vsub.f32 1.5, %v421_v44 }
 0x2ba   :  { %578 = vpow2.f32 %v542_v48  ;;  %v423_v63 = vmul.f32 %v577_v60, %v422_v62 }
 0x2bb   :  { %580 = vpow2.f32 %v543_v29 }
 0x2bc   :  { %v427_v0 = vsel %vm426_vm2, %v577_v60, %v423_v63 }
 0x2bd   :  { %v430_v1 = vmul.f32 %v427_v0, %v392_v42  ;;  %v431_v2 = vmul.f32 %v427_v0, %v393_v6 }
 0x2bf   :  { %v544_v3 = vmul.f32 -1.442695, %v430_v1  ;;  %v545_v4 = vmul.f32 -1.442695, %v431_v2 }
 0x2c0   :  { %v579_v13 = vpop.eup %578 }
 0x2c1   :  { %v581_v50 = vpop.eup %580  ;;  %v444_v8 = vadd.f32 1.0, %v579_v13  ;;  %582 = vpow2.f32 %v544_v3 }
 0x2c2   :  { %v445_v35 = vadd.f32 1.0, %v581_v50  ;;  %584 = vpow2.f32 %v545_v4 }
 0x2c3   :  { %586 = vrcp.f32 %v444_v8  ;;  %vm453_vm5 = vweird.f32 %v444_v8  ;;  %v457_v18 = vand.u32 2147483647, %v444_v8  ;;  %v459_v5 = vand.u32 2147483648, %v444_v8 }
 0x2c4   :  { %588 = vrcp.f32 %v445_v35  ;;  %v474_v20 = vand.u32 2147483648, %v445_v35  ;;  %v472_v12 = vand.u32 2147483647, %v445_v35  ;;  %vm468_vm7 = vweird.f32 %v445_v35 }
 0x2c5   :  { %vm458_vm11 = vcmp.eq.f32.partialorder %v457_v18, 8.507059e+37  ;;  %v460_v45 = vor.u32 1.1754944e-38, %v459_v5 }
 0x2c6   :  { %v475_v23 = vor.u32 1.1754944e-38, %v474_v20  ;;  %vm473_vm10 = vcmp.eq.f32.partialorder %v472_v12, 8.507059e+37 }
 0x2c7   :  { %v583_v39 = vpop.eup %582 }
 0x2c8   :  { %v585_v47 = vpop.eup %584  ;;  %v821_v19 = vadd.f32 1.0, %v583_v39 }
 0x2c9   :  { %v587_v53 = vpop.eup %586  ;;  %v447_v25 = vadd.f32 1.0, %v585_v47 }
 0x2ca   :  { %v589_v34 = vpop.eup %588  ;;  %590 = vrcp.f32 %v821_v19  ;;  %v449_v40 = vmul.f32 %v587_v53, %v444_v8  ;;  %vm454_vm3 = vweird.f32 %v587_v53  ;;  %vm483_vm14 = vweird.f32 %v821_v19 }
 0x2cb   :  { %592 = vrcp.f32 %v447_v25  ;;  %v464_v15 = vmul.f32 %v589_v34, %v445_v35  ;;  %vm469_vm4 = vweird.f32 %v589_v34  ;;  %vm824_vm6 = vmor %vm453_vm5, %vm454_vm3  ;;  %v504_v27 = vand.u32 2147483648, %v447_v25 }
 0x2cc   :  { %v450_v16 = vsub.f32 1.0, %v449_v40  ;;  %vm470_vm8 = vmor %vm468_vm7, %vm469_vm4  ;;  %v502_v31 = vand.u32 2147483647, %v447_v25  ;;  %v489_v37 = vand.u32 2147483648, %v821_v19  ;;  %v487_v60 = vand.u32 2147483647, %v821_v19 }
 0x2cd   :  { %v465_v7 = vsub.f32 1.0, %v464_v15  ;;  %vm498_vm0 = vweird.f32 %v447_v25  ;;  %v505_v55 = vor.u32 1.1754944e-38, %v504_v27 }
 0x2ce   :  { %v451_v26 = vmul.f32 %v587_v53, %v450_v16  ;;  %vm503_vm2 = vcmp.eq.f32.partialorder %v502_v31, 8.507059e+37  ;;  %v490_v61 = vor.u32 1.1754944e-38, %v489_v37  ;;  %vm488_vm3 = vcmp.eq.f32.partialorder %v487_v60, 8.507059e+37 }
 0x2cf   :  { %v466_v17 = vmul.f32 %v589_v34, %v465_v7 }
 0x2d0   :  { %v591_v28 = vpop.eup %590  ;;  %v452_v14 = vadd.f32 %v587_v53, %v451_v26 }
 0x2d1   :  { %v593_v10 = vpop.eup %592  ;;  %v467_v24 = vadd.f32 %v589_v34, %v466_v17  ;;  %v479_v22 = vmul.f32 %v591_v28, %v821_v19  ;;  %vm484_vm12 = vweird.f32 %v591_v28 }
 0x2d2   :  { %v494_v36 = vmul.f32 %v593_v10, %v447_v25  ;;  %v456_v41 = vsel %vm824_vm6, %v587_v53, %v452_v14  ;;  %vm499_vm13 = vweird.f32 %v593_v10  ;;  %vm834_vm15 = vmor %vm483_vm14, %vm484_vm12 }
 0x2d3   :  { %v471_v42 = vsel %vm470_vm8, %v589_v34, %v467_v24  ;;  %v480_v6 = vsub.f32 1.0, %v479_v22  ;;  %v461_v56 = vsel %vm458_vm11, %v460_v45, %v456_v41  ;;  %vm500_vm1 = vmor %vm498_vm0, %vm499_vm13 }
 0x2d4   :  { %v476_v46 = vsel %vm473_vm10, %v475_v23, %v471_v42  ;;  %v495_v49 = vsub.f32 1.0, %v494_v36 }
 0x2d5   :  { %v481_v33 = vmul.f32 %v591_v28, %v480_v6  ;;  %v512_v30 = vrot.slane %v476_v46, 4 }
 0x2d6   :  { %v496_v59 = vmul.f32 %v593_v10, %v495_v49 }
 0x2d7   :  { %v482_v32 = vadd.f32 %v591_v28, %v481_v33  ;;  %v515_v38 = vsel %vm514_vm9, %v461_v56, %v512_v30 }
 0x2d8   :  { %v497_v51 = vadd.f32 %v593_v10, %v496_v59  ;;  %v519_v52 = vmul.f32 %v515_v38, %v709_v9 }
 0x2d9   :  { %v486_v57 = vsel %vm834_vm15, %v591_v28, %v482_v32 }
 0x2da   :  { %v501_v58 = vsel %vm500_vm1, %v593_v10, %v497_v51  ;;  %521 = vst [vmem:[#allocation5] sm:$0xff] %v519_v52  ;;  %v491_v48 = vsel %vm488_vm3, %v490_v61, %v486_v57 }
 0x2db   :  { %v506_v43 = vsel %vm503_vm2, %v505_v55, %v501_v58 }
 0x2dc   :  { %v513_v44 = vrot.slane %v506_v43, 4 }
 0x2de   :  { %v516_v9 = vsel %vm514_vm9, %v491_v48, %v513_v44 }
 0x2df   :  { %v520_v29 = vmul.f32 %v516_v9, %v712_v11 }
 0x2e1   :  { %522 = vst [vmem:[#allocation5 + $0x8] sm:$0xff] %v520_v29 }
 0x2e2   :  { %535 = dma.vmem_to_hbm [thread:$0]  %s528_s6, 256, %s530_s9, [#allocation4], %s647_s23, %s647_s23, %s648_s24  }
 0x2e3   :  { %644 = dma.done.wait [#allocation4], 256  }
 0x2e4   :  { %645 = vsyncadd [#allocation4], 4294967040 }
 0x2e5   :  { %540 = vsyncpa [#allocation3], 1 }
 0x2e6   :  { %541 = vsyncpa [#allocation4], 1 }

</bundles_post_ra>
